<compile_context>
chip_gen: v7x
topology: tpu7x:2x2x1
jax: 0.10.0
libtpu: 0.0.40
codegen_flags: <defaults>
</compile_context>

<pallas_src>
import numpy as np
import jax
import jax.numpy as jnp
from jax.experimental import pallas as pl
from jax.experimental.pallas import tpu as pltpu

K = 4               # users (in_dim)
TWO_K = 2 * K       # real-valued dimension
BN_EPS = 1e-5
NORM_EPS = 1e-12


# ----------------------------------------------------------------------------
# Constant indicator tensor used to fold Conv1d(6->C, k=3, pad=1) into a dense
# [3*2K, K*C] matmul weight:
#   rows   r = group*2K + half*K + pos   (column layout of `full` in the kernel)
#   cols   q = l*C + o                   (output-position-major feature layout)
# T[c, t, r, l] == 1  iff input channel c at tap t reads row r for output pos l.
# ----------------------------------------------------------------------------
def _build_conv_fold_indicator():
    T = np.zeros((6, 3, 3 * TWO_K, K), np.float32)
    for c in range(6):
        grp, half = divmod(c, 2)
        for t in range(3):
            for l in range(K):
                p = l - 1 + t                       # input position (pad=1)
                if 0 <= p < K:
                    r = grp * TWO_K + half * K + p
                    T[c, t, r, l] = 1.0
    return T


_CONV_FOLD = jnp.asarray(_build_conv_fold_indicator())   # [6, 3, 3*2K, K]


# ----------------------------------------------------------------------------
# Front-end kernel: gradient step + conv (as one matmul).  Gridded over batch.
# ----------------------------------------------------------------------------
def _frontend_kernel(x_ref, g_ref, ascale_ref, wconv_ref, bconv_ref,
                     feat_ref, xobm_ref):
    """
    x_ref     [tb, 2K]       x_R.T tile (f32)
    g_ref     [tb, M, 2K]    G_R tile (f32)
    ascale    [2K, 2K]       alpha * scale_mat.T (f32)
    wconv     [3*2K, K*C]    Conv1d folded into a dense matmul weight (bf16)
    bconv     [1, K*C]       conv bias broadcast over positions (f32)
    feat_ref  [tb, K*C]      relu(conv) features, column index = l*C + c (f32)
    xobm_ref  [tb, 2K]       x after the OBMNet update (f32)
    """
    x = x_ref[...]                                                    # [tb, 2K]
    g = g_ref[...]                                                    # [tb, M, 2K]

    # --- OBMNet step: sigmoid(-G x), then G^T sigmoid(.)  (f32, VPU/EUP) ---
    s = jax.nn.sigmoid(-jnp.sum(g * x[:, None, :], axis=-1))          # [tb, M]
    del_x = jnp.sum(g * s[:, :, None], axis=1)                        # [tb, 2K]

    # --- x + alpha*(scale_mat @ del_x): 2K unrolled VPU FMAs (no 8-deep MXU op) ---
    asc = ascale_ref[...]                                             # [2K, 2K]
    x_obm = x
    for j in range(TWO_K):
        x_obm = x_obm + del_x[:, j:j + 1] * asc[j:j + 1, :]

    # --- F.normalize(grad, p=2) over the 2K axis (eps = 1e-12) ---
    gnorm = jnp.sqrt(jnp.sum(del_x * del_x, axis=-1, keepdims=True))
    grad_n = del_x / jnp.maximum(gnorm, NORM_EPS)

    # --- channel stack: columns = group*2K + half*K + pos (matches wconv rows) ---
    full = jnp.concatenate([x, grad_n, x_obm], axis=-1)               # [tb, 3*2K]

    # --- Conv1d(6->C, k=3, pad=1): one bf16 MXU matmul (zeros folded into wconv) ---
    conv = jnp.dot(full.astype(jnp.bfloat16), wconv_ref[...],
                   preferred_element_type=jnp.float32)                # [tb, K*C]
    feat_ref[...] = jnp.maximum(conv + bconv_ref[...], 0.0)
    xobm_ref[...] = x_obm


# ----------------------------------------------------------------------------
# Back-end kernel: BatchNorm(conv) + fc1..fc4 MLP + residual.  Whole batch
# (BatchNorm needs global batch statistics -> grid-less).
# ----------------------------------------------------------------------------
def _backend_kernel(feat_ref, xobm_ref, bng_ref, bnb_ref,
                    w1_ref, b1_ref, bn1g_ref, bn1b_ref,
                    w2_ref, b2_ref, bn2g_ref, bn2b_ref,
                    w3_ref, b3_ref, bn3g_ref, bn3b_ref,
                    w4_ref, b4_ref, out_ref):
    feat = feat_ref[...]                                              # [B, K*C] f32
    C = bng_ref.shape[-1]
    L = feat.shape[-1] // C                                           # = K positions

    # --- BatchNorm1d(C): stats over (batch, position), no in-kernel reshape ---
    colmean = jnp.mean(feat, axis=0, keepdims=True)                   # [1, K*C]
    mu_c = sum(colmean[:, l * C:(l + 1) * C] for l in range(L)) / L   # [1, C]
    mu_full = jnp.concatenate([mu_c] * L, axis=-1)                    # [1, K*C]
    cent = feat - mu_full
    colvar = jnp.mean(cent * cent, axis=0, keepdims=True)             # [1, K*C]
    var_c = sum(colvar[:, l * C:(l + 1) * C] for l in range(L)) / L   # [1, C]
    scale_c = bng_ref[...] * jax.lax.rsqrt(var_c + BN_EPS)            # [1, C]
    scale_full = jnp.concatenate([scale_c] * L, axis=-1)              # [1, K*C]
    shift_full = jnp.concatenate([bnb_ref[...]] * L, axis=-1)         # [1, K*C]
    h = cent * scale_full + shift_full                                # [B, K*C]

    def fc_bn_relu(h, w_ref, b_ref, g_ref, beta_ref):
        y = jnp.dot(h.astype(jnp.bfloat16), w_ref[...],
                    preferred_element_type=jnp.float32) + b_ref[...]
        mu = jnp.mean(y, axis=0, keepdims=True)
        var = jnp.mean((y - mu) ** 2, axis=0, keepdims=True)
        y = (y - mu) * jax.lax.rsqrt(var + BN_EPS) * g_ref[...] + beta_ref[...]
        return jnp.maximum(y, 0.0)

    h = fc_bn_relu(h, w1_ref, b1_ref, bn1g_ref, bn1b_ref)             # [B, 128]
    h = fc_bn_relu(h, w2_ref, b2_ref, bn2g_ref, bn2b_ref)             # [B, 64]
    h = fc_bn_relu(h, w3_ref, b3_ref, bn3g_ref, bn3b_ref)             # [B, 32]
    d = jnp.dot(h.astype(jnp.bfloat16), w4_ref[...],
                preferred_element_type=jnp.float32) + b4_ref[...]     # [B, 2K]

    # residual + [2K, B] store (PyTorch output layout, lane axis = batch)
    out_ref[...] = (xobm_ref[...] + d).T


def _pick_batch_tile(B):
    """Largest convenient batch tile; must divide B and keep sublanes 8-aligned."""
    if B <= 256:
        return B
    for t in (256, 128, 64, 32, 16, 8):
        if B % t == 0:
            return t
    return B


def net_one_bit_forward(params, x_R, G_R, snr_lin, scale_fact, tau=5):
    """JAX/Pallas equivalent of Net_One_Bit.forward. Returns [2K, B] like PyTorch."""
    del snr_lin, tau  # unused by the reference forward()
    B, M, _ = G_R.shape
    C = params['conv1_w'].shape[0]

    # scale_mat = [[Re, -Im], [Im, Re]] from diag_embed(scale_fact); fold alpha in.
    d_re = jnp.diag(jnp.real(scale_fact).astype(jnp.float32))
    d_im = jnp.diag(jnp.imag(scale_fact).astype(jnp.float32))
    scale_mat = jnp.concatenate(
        [jnp.concatenate([d_re, -d_im], axis=1),
         jnp.concatenate([d_im, d_re], axis=1)], axis=0)              # [2K, 2K]
    ascale = (params['alpha'][0] * scale_mat.T).astype(jnp.float32)

    x_in0 = x_R.T.astype(jnp.float32)                                 # [B, 2K]
    g = G_R.astype(jnp.float32)                                       # [B, M, 2K]

    # ---- fold Conv1d(6->C,3,pad=1) into a dense [3*2K, K*C] matmul weight ----
    # single einsum against the constant indicator (no per-element scatters)
    conv_w = params['conv1_w'].astype(jnp.float32)                    # [C, 6, 3]
    wconv = jnp.einsum('oct,ctrl->rlo', conv_w, _CONV_FOLD)           # [3*2K, K, C]
    wconv = wconv.reshape(3 * TWO_K, K * C).astype(jnp.bfloat16)
    bconv = jnp.tile(params['conv1_b'].astype(jnp.float32), K)[None, :]   # [1, K*C]

    # ---- fc1 fused: permute W1 [128, C*K] (PyTorch c*K+l flatten) -> [K*C, 128] ----
    W1 = params['fc1_w'].astype(jnp.float32)
    w1 = jnp.transpose(W1.reshape(128, C, K), (2, 1, 0)).reshape(K * C, 128)
    w1 = w1.astype(jnp.bfloat16)

    tb = _pick_batch_tile(B)
    grid = (B // tb,)

    # ---------------- front-end: gridded over batch, pipelined DMA ----------------
    feat, x_obm = pl.pallas_call(
        _frontend_kernel,
        grid=grid,
        in_specs=[
            pl.BlockSpec((tb, TWO_K), lambda i: (i, 0)),
            pl.BlockSpec((tb, M, TWO_K), lambda i: (i, 0, 0)),
            pl.BlockSpec((TWO_K, TWO_K), lambda i: (0, 0)),
            pl.BlockSpec((3 * TWO_K, K * C), lambda i: (0, 0)),
            pl.BlockSpec((1, K * C), lambda i: (0, 0)),
        ],
        out_specs=(
            pl.BlockSpec((tb, K * C), lambda i: (i, 0)),
            pl.BlockSpec((tb, TWO_K), lambda i: (i, 0)),
        ),
        out_shape=(
            jax.ShapeDtypeStruct((B, K * C), jnp.float32),
            jax.ShapeDtypeStruct((B, TWO_K), jnp.float32),
        ),
        compiler_params=pltpu.CompilerParams(
            dimension_semantics=("parallel",)),
    )(x_in0, g, ascale, wconv, bconv)

    # ---------------- back-end: whole-batch BN + MLP + residual -------------------
    # TODO(synk): for very large batches this stage would need a two-pass (stats /
    #             normalize) grid to bound VMEM; whole-batch is required for exact
    #             training-mode BatchNorm semantics.
    args = [
        feat, x_obm,
        params['bn_g'][None, :], params['bn_b'][None, :],
        w1, params['fc1_b'][None, :],
        params['bn1_g'][None, :], params['bn1_b'][None, :],
        params['fc2_w'].T.astype(jnp.bfloat16), params['fc2_b'][None, :],
        params['bn2_g'][None, :], params['bn2_b'][None, :],
        params['fc3_w'].T.astype(jnp.bfloat16), params['fc3_b'][None, :],
        params['bn3_g'][None, :], params['bn3_b'][None, :],
        params['fc4_w'].T.astype(jnp.bfloat16), params['fc4_b'][None, :],
    ]
    out = pl.pallas_call(
        _backend_kernel,
        out_shape=jax.ShapeDtypeStruct((TWO_K, B), jnp.float32),
        in_specs=[pl.BlockSpec(memory_space=pltpu.MemorySpace.VMEM)] * len(args),
        out_specs=pl.BlockSpec(memory_space=pltpu.MemorySpace.VMEM),
    )(*args)

    return out                                                        # [2K, B]


def init_params(key, in_dim=4, cnn_chan=64):
    """Deterministic synthetic parameters matching Net_One_Bit.__init__ shapes."""
    ks = jax.random.split(key, 12)

    def u(k, shape, scale):
        return scale * (jax.random.uniform(k, shape, jnp.float32) * 2.0 - 1.0)

    return dict(
        alpha=0.01 * jax.random.uniform(ks[0], (1,), jnp.float32),
        norm_factor=jax.random.uniform(ks[1], (1,), jnp.float32),     # unused in fwd
        conv1_w=u(ks[2], (cnn_chan, 6, 3), 0.2),
        conv1_b=u(ks[3], (cnn_chan,), 0.1),
        fc1_w=u(ks[4], (128, cnn_chan * in_dim), 0.06),
        fc1_b=u(ks[5], (128,), 0.06),
        fc2_w=u(ks[6], (64, 128), 0.09),
        fc2_b=u(ks[7], (64,), 0.09),
        fc3_w=u(ks[8], (32, 64), 0.12),
        fc3_b=u(ks[9], (32,), 0.12),
        fc4_w=u(ks[10], (8, 32), 0.17),
        fc4_b=u(ks[11], (8,), 0.17),
        bn_g=jnp.ones((cnn_chan,), jnp.float32), bn_b=jnp.zeros((cnn_chan,), jnp.float32),
        bn1_g=jnp.ones((128,), jnp.float32), bn1_b=jnp.zeros((128,), jnp.float32),
        bn2_g=jnp.ones((64,), jnp.float32), bn2_b=jnp.zeros((64,), jnp.float32),
        bn3_g=jnp.ones((32,), jnp.float32), bn3_b=jnp.zeros((32,), jnp.float32),
    )


if __name__ == "__main__":
    key = jax.random.PRNGKey(0)
    B, M = 8, 16                       # small batch / measurement dim
    in_dim, cnn_chan = 4, 64           # fixed by fc1(256, 128) = cnn_chan * in_dim

    kp, kx, kg, ksr, ksi, ksnr = jax.random.split(key, 6)
    params = init_params(kp, in_dim, cnn_chan)

    x_R = jax.random.normal(kx, (2 * in_dim, B), jnp.float32)         # [2K, B]
    G_R = jax.random.normal(kg, (B, M, 2 * in_dim), jnp.float32)      # [B, M, 2K]
    scale_fact = (jax.random.normal(ksr, (in_dim,), jnp.float32)
                  + 1j * jax.random.normal(ksi, (in_dim,), jnp.float32)).astype(jnp.complex64)
    snr_lin = jax.random.uniform(ksnr, (B,), jnp.float32)             # unused in fwd

    out = net_one_bit_forward(params, x_R, G_R, snr_lin, scale_fact)
    out = jax.block_until_ready(out)
    assert out.shape == (2 * in_dim, B)
    assert bool(jnp.all(jnp.isfinite(out)))
    print("KERNEL_OK")
</pallas_src>

<mosaic_0001>
module attributes {stable_mosaic.version = 11 : i64} {
  func.func @_frontend_kernel(%arg0: i32, %arg1: memref<8x8xf32, #tpu.memory_space<vmem>>, %arg2: memref<8x16x8xf32, #tpu.memory_space<vmem>>, %arg3: memref<8x8xf32, #tpu.memory_space<vmem>>, %arg4: memref<24x256xbf16, #tpu.memory_space<vmem>>, %arg5: memref<1x256xf32, #tpu.memory_space<vmem>>, %arg6: memref<8x256xf32, #tpu.memory_space<vmem>>, %arg7: memref<8x8xf32, #tpu.memory_space<vmem>>) attributes {dimension_semantics = [#tpu.dimension_semantics<parallel>], iteration_bounds = array<i64: 1>, scalar_prefetch = 0 : i64, scratch_operands = 0 : i64, tpu.core_type = #tpu.core_type<tc>, window_params = [{transform_indices = @transform_0, window_bounds = array<i64: 8, 8>}, {transform_indices = @transform_1, window_bounds = array<i64: 8, 16, 8>}, {pipeline_mode = #tpu.pipeline_mode<synchronous>, transform_indices = @transform_2, window_bounds = array<i64: 8, 8>}, {pipeline_mode = #tpu.pipeline_mode<synchronous>, transform_indices = @transform_3, window_bounds = array<i64: 24, 256>}, {pipeline_mode = #tpu.pipeline_mode<synchronous>, transform_indices = @transform_4, window_bounds = array<i64: 1, 256>}, {transform_indices = @transform_5, window_bounds = array<i64: 8, 256>}, {transform_indices = @transform_6, window_bounds = array<i64: 8, 8>}]} {
    %c0 = arith.constant 0 : index
    %c0_0 = arith.constant 0 : index
    %0 = vector.load %arg1[%c0, %c0_0] : memref<8x8xf32, #tpu.memory_space<vmem>>, vector<8x8xf32>
    %c0_1 = arith.constant 0 : index
    %c0_2 = arith.constant 0 : index
    %c0_3 = arith.constant 0 : index
    %1 = vector.load %arg2[%c0_1, %c0_2, %c0_3] : memref<8x16x8xf32, #tpu.memory_space<vmem>>, vector<8x16x8xf32>
    %2 = vector.shape_cast %0 : vector<8x8xf32> to vector<8x1x8xf32>
    %3 = vector.broadcast %2 : vector<8x1x8xf32> to vector<8x16x8xf32>
    %4 = arith.mulf %1, %3 : vector<8x16x8xf32>
    %cst = arith.constant dense<0.000000e+00> : vector<8x16xf32>
    %5 = vector.multi_reduction <add>, %4, %cst [2] : vector<8x16x8xf32> to vector<8x16xf32>
    %cst_4 = arith.constant 0.000000e+00 : f32
    %6 = vector.broadcast %cst_4 : f32 to vector<8x16xf32>
    %7 = arith.subf %6, %5 : vector<8x16xf32>
    %8 = arith.negf %7 : vector<8x16xf32>
    %9 = math.exp %8 : vector<8x16xf32>
    %cst_5 = arith.constant 1.000000e+00 : f32
    %10 = vector.broadcast %cst_5 : f32 to vector<8x16xf32>
    %11 = arith.addf %10, %9 : vector<8x16xf32>
    %12 = arith.divf %10, %11 : vector<8x16xf32>
    %13 = vector.shape_cast %12 : vector<8x16xf32> to vector<8x16x1xf32>
    %14 = vector.broadcast %13 : vector<8x16x1xf32> to vector<8x16x8xf32>
    %15 = arith.mulf %1, %14 : vector<8x16x8xf32>
    %cst_6 = arith.constant dense<0.000000e+00> : vector<8x8xf32>
    %16 = vector.multi_reduction <add>, %15, %cst_6 [1] : vector<8x16x8xf32> to vector<8x8xf32>
    %c0_7 = arith.constant 0 : index
    %c0_8 = arith.constant 0 : index
    %17 = vector.load %arg3[%c0_7, %c0_8] : memref<8x8xf32, #tpu.memory_space<vmem>>, vector<8x8xf32>
    %18 = vector.extract_strided_slice %16 {offsets = [0, 0], sizes = [8, 1], strides = [1, 1]} : vector<8x8xf32> to vector<8x1xf32>
    %19 = vector.extract_strided_slice %17 {offsets = [0, 0], sizes = [1, 8], strides = [1, 1]} : vector<8x8xf32> to vector<1x8xf32>
    %20 = vector.broadcast %18 : vector<8x1xf32> to vector<8x8xf32>
    %21 = vector.broadcast %19 : vector<1x8xf32> to vector<8x8xf32>
    %22 = arith.mulf %20, %21 : vector<8x8xf32>
    %23 = arith.addf %0, %22 : vector<8x8xf32>
    %24 = vector.extract_strided_slice %16 {offsets = [0, 1], sizes = [8, 1], strides = [1, 1]} : vector<8x8xf32> to vector<8x1xf32>
    %25 = vector.extract_strided_slice %17 {offsets = [1, 0], sizes = [1, 8], strides = [1, 1]} : vector<8x8xf32> to vector<1x8xf32>
    %26 = vector.broadcast %24 : vector<8x1xf32> to vector<8x8xf32>
    %27 = vector.broadcast %25 : vector<1x8xf32> to vector<8x8xf32>
    %28 = arith.mulf %26, %27 : vector<8x8xf32>
    %29 = arith.addf %23, %28 : vector<8x8xf32>
    %30 = vector.extract_strided_slice %16 {offsets = [0, 2], sizes = [8, 1], strides = [1, 1]} : vector<8x8xf32> to vector<8x1xf32>
    %31 = vector.extract_strided_slice %17 {offsets = [2, 0], sizes = [1, 8], strides = [1, 1]} : vector<8x8xf32> to vector<1x8xf32>
    %32 = vector.broadcast %30 : vector<8x1xf32> to vector<8x8xf32>
    %33 = vector.broadcast %31 : vector<1x8xf32> to vector<8x8xf32>
    %34 = arith.mulf %32, %33 : vector<8x8xf32>
    %35 = arith.addf %29, %34 : vector<8x8xf32>
    %36 = vector.extract_strided_slice %16 {offsets = [0, 3], sizes = [8, 1], strides = [1, 1]} : vector<8x8xf32> to vector<8x1xf32>
    %37 = vector.extract_strided_slice %17 {offsets = [3, 0], sizes = [1, 8], strides = [1, 1]} : vector<8x8xf32> to vector<1x8xf32>
    %38 = vector.broadcast %36 : vector<8x1xf32> to vector<8x8xf32>
    %39 = vector.broadcast %37 : vector<1x8xf32> to vector<8x8xf32>
    %40 = arith.mulf %38, %39 : vector<8x8xf32>
    %41 = arith.addf %35, %40 : vector<8x8xf32>
    %42 = vector.extract_strided_slice %16 {offsets = [0, 4], sizes = [8, 1], strides = [1, 1]} : vector<8x8xf32> to vector<8x1xf32>
    %43 = vector.extract_strided_slice %17 {offsets = [4, 0], sizes = [1, 8], strides = [1, 1]} : vector<8x8xf32> to vector<1x8xf32>
    %44 = vector.broadcast %42 : vector<8x1xf32> to vector<8x8xf32>
    %45 = vector.broadcast %43 : vector<1x8xf32> to vector<8x8xf32>
    %46 = arith.mulf %44, %45 : vector<8x8xf32>
    %47 = arith.addf %41, %46 : vector<8x8xf32>
    %48 = vector.extract_strided_slice %16 {offsets = [0, 5], sizes = [8, 1], strides = [1, 1]} : vector<8x8xf32> to vector<8x1xf32>
    %49 = vector.extract_strided_slice %17 {offsets = [5, 0], sizes = [1, 8], strides = [1, 1]} : vector<8x8xf32> to vector<1x8xf32>
    %50 = vector.broadcast %48 : vector<8x1xf32> to vector<8x8xf32>
    %51 = vector.broadcast %49 : vector<1x8xf32> to vector<8x8xf32>
    %52 = arith.mulf %50, %51 : vector<8x8xf32>
    %53 = arith.addf %47, %52 : vector<8x8xf32>
    %54 = vector.extract_strided_slice %16 {offsets = [0, 6], sizes = [8, 1], strides = [1, 1]} : vector<8x8xf32> to vector<8x1xf32>
    %55 = vector.extract_strided_slice %17 {offsets = [6, 0], sizes = [1, 8], strides = [1, 1]} : vector<8x8xf32> to vector<1x8xf32>
    %56 = vector.broadcast %54 : vector<8x1xf32> to vector<8x8xf32>
    %57 = vector.broadcast %55 : vector<1x8xf32> to vector<8x8xf32>
    %58 = arith.mulf %56, %57 : vector<8x8xf32>
    %59 = arith.addf %53, %58 : vector<8x8xf32>
    %60 = vector.extract_strided_slice %16 {offsets = [0, 7], sizes = [8, 1], strides = [1, 1]} : vector<8x8xf32> to vector<8x1xf32>
    %61 = vector.extract_strided_slice %17 {offsets = [7, 0], sizes = [1, 8], strides = [1, 1]} : vector<8x8xf32> to vector<1x8xf32>
    %62 = vector.broadcast %60 : vector<8x1xf32> to vector<8x8xf32>
    %63 = vector.broadcast %61 : vector<1x8xf32> to vector<8x8xf32>
    %64 = arith.mulf %62, %63 : vector<8x8xf32>
    %65 = arith.addf %59, %64 : vector<8x8xf32>
    %66 = arith.mulf %16, %16 : vector<8x8xf32>
    %cst_9 = arith.constant dense<0.000000e+00> : vector<8xf32>
    %67 = vector.multi_reduction <add>, %66, %cst_9 [1] : vector<8x8xf32> to vector<8xf32>
    %68 = vector.shape_cast %67 : vector<8xf32> to vector<8x1xf32>
    %69 = math.sqrt %68 : vector<8x1xf32>
    %cst_10 = arith.constant 9.99999996E-13 : f32
    %70 = vector.broadcast %cst_10 : f32 to vector<8x1xf32>
    %71 = arith.maximumf %69, %70 : vector<8x1xf32>
    %72 = vector.broadcast %71 : vector<8x1xf32> to vector<8x8xf32>
    %73 = arith.divf %16, %72 : vector<8x8xf32>
    %74 = tpu.concatenate %0, %73, %65 in 1 : vector<8x8xf32>, vector<8x8xf32>, vector<8x8xf32> -> vector<8x24xf32>
    %75 = arith.truncf %74 : vector<8x24xf32> to vector<8x24xbf16>
    %c0_11 = arith.constant 0 : index
    %c0_12 = arith.constant 0 : index
    %76 = vector.load %arg4[%c0_11, %c0_12] : memref<24x256xbf16, #tpu.memory_space<vmem>>, vector<24x256xbf16>
    %cst_13 = arith.constant dense<0.000000e+00> : vector<8x256xf32>
    %77 = tpu.matmul %75, %76, %cst_13 {dimension_numbers = #tpu.dot_dimension_numbers<[1], [0], [0], [1], [0, 0, 1, 1], [], []>} : vector<8x24xbf16>, vector<24x256xbf16>, vector<8x256xf32> -> vector<8x256xf32>
    %c0_14 = arith.constant 0 : index
    %c0_15 = arith.constant 0 : index
    %78 = vector.load %arg5[%c0_14, %c0_15] : memref<1x256xf32, #tpu.memory_space<vmem>>, vector<1x256xf32>
    %79 = vector.broadcast %78 : vector<1x256xf32> to vector<8x256xf32>
    %80 = arith.addf %77, %79 : vector<8x256xf32>
    %cst_16 = arith.constant 0.000000e+00 : f32
    %81 = vector.broadcast %cst_16 : f32 to vector<8x256xf32>
    %82 = arith.maximumf %80, %81 : vector<8x256xf32>
    %c0_17 = arith.constant 0 : index
    %c0_18 = arith.constant 0 : index
    %83 = vector.load %arg6[%c0_17, %c0_18] : memref<8x256xf32, #tpu.memory_space<vmem>>, vector<8x256xf32>
    tpu.vector_store %arg6[%c0_17, %c0_18], %82 {strides = array<i32>} : memref<8x256xf32, #tpu.memory_space<vmem>>, vector<8x256xf32>,
    %c0_19 = arith.constant 0 : index
    %c0_20 = arith.constant 0 : index
    %84 = vector.load %arg7[%c0_19, %c0_20] : memref<8x8xf32, #tpu.memory_space<vmem>>, vector<8x8xf32>
    tpu.vector_store %arg7[%c0_19, %c0_20], %65 {strides = array<i32>} : memref<8x8xf32, #tpu.memory_space<vmem>>, vector<8x8xf32>,
    return
  }
  func.func @transform_0(%arg0: i32) -> (i32, i32) {
    %c0_i32 = arith.constant 0 : i32
    %c0_i32_0 = arith.constant 0 : i32
    return %arg0, %c0_i32 : i32, i32
  }
  func.func @transform_1(%arg0: i32) -> (i32, i32, i32) {
    %c0_i32 = arith.constant 0 : i32
    %c0_i32_0 = arith.constant 0 : i32
    %c0_i32_1 = arith.constant 0 : i32
    return %arg0, %c0_i32, %c0_i32_0 : i32, i32, i32
  }
  func.func @transform_2(%arg0: i32) -> (i32, i32) {
    %c0_i32 = arith.constant 0 : i32
    %c0_i32_0 = arith.constant 0 : i32
    %c0_i32_1 = arith.constant 0 : i32
    return %c0_i32, %c0_i32_0 : i32, i32
  }
  func.func @transform_3(%arg0: i32) -> (i32, i32) {
    %c0_i32 = arith.constant 0 : i32
    %c0_i32_0 = arith.constant 0 : i32
    %c0_i32_1 = arith.constant 0 : i32
    return %c0_i32, %c0_i32_0 : i32, i32
  }
  func.func @transform_4(%arg0: i32) -> (i32, i32) {
    %c0_i32 = arith.constant 0 : i32
    %c0_i32_0 = arith.constant 0 : i32
    %c0_i32_1 = arith.constant 0 : i32
    return %c0_i32, %c0_i32_0 : i32, i32
  }
  func.func @transform_5(%arg0: i32) -> (i32, i32) {
    %c0_i32 = arith.constant 0 : i32
    %c0_i32_0 = arith.constant 0 : i32
    return %arg0, %c0_i32 : i32, i32
  }
  func.func @transform_6(%arg0: i32) -> (i32, i32) {
    %c0_i32 = arith.constant 0 : i32
    %c0_i32_0 = arith.constant 0 : i32
    return %arg0, %c0_i32 : i32, i32
  }
}

</mosaic_0001>

<bundles_post_ra>
// kernel: tpu_custom_call.1
= control target key start
LH: loop header
LB: loop body
LE: loop exit
PB: predicated region body
PF: predicated region fallthrough
CT: control target
= control target key end

     0   :  { %12 = vsyncpa [#allocation3], 0  ;;  %v47_v1 = vlaneseq  ;;  %v1387_v2 = vmov 1966171168   ;;  %s2048_s0 = inlined_call_operand.vmem [shape: f32[8,8], index: 0, kind: input, shape index: {}]   ;;  %s2049_s1 = inlined_call_operand.vmem [shape: f32[8,16,8], index: 1, kind: input, shape index: {}]   ;;  %s2050_s2 = inlined_call_operand.vmem [shape: f32[8,8], index: 2, kind: input, shape index: {}]   ;;  %s2051_s3 = inlined_call_operand.vmem [shape: bf16[24,256], index: 3, kind: input, shape index: {}]   ;;  %s2052_s4 = inlined_call_operand.vmem [shape: f32[1,256], index: 4, kind: input, shape index: {}]   ;;  %s2053_s5 = inlined_call_operand.hbm [shape: f32[8,256], index: 5, kind: output, shape index: {0}]   ;;  %s2054_s6 = inlined_call_operand.hbm [shape: f32[8,8], index: 6, kind: output, shape index: {1}]  }
   0x1   :  { %v25_v0 = vld [vmem:[%s2048_s0] sm:$0xff]  ;;  %v45_v3 = vunpack.c.l.s4 %v1387_v2 }
   0x2   :  { %v1438_v4 = vshrl.u32 %v47_v1, 7  ;;  %v43_v6 = vcombine.high %v25_v0, %v25_v0 }
   0x3   :  { %v46_v5 = vunpack.c.0.s8 %v45_v3 }
   0x5   :  { %v49_v7 = vsub.s32 %v46_v5, %v1438_v4 }
   0x6   :  { %13 = vsyncpa [#allocation5], 0  ;;  %v1442_v9 = vsub.s32 0, %v1438_v4  ;;  %v1447_v14 = vld [vmem:[%s2049_s1] sm:$0xff]  ;;  %v1452_v15 = vld [vmem:[%s2049_s1 + $0x48] sm:$0xff]  ;;  %vm148_vm0 = vcmask 64512  }
   0x7   :  { %v50_v8 = vrot.slane %v25_v0, %v49_v7  ;;  %v57_v10 = vrot.slane %v43_v6, %v49_v7  ;;  %v1457_v16 = vld [vmem:[%s2049_s1 + $0x8] sm:$0xff]  ;;  %v1464_v20 = vld [vmem:[%s2049_s1 + $0x10] sm:$0xff]  ;;  %v1473_v27 = vld [vmem:[%s2049_s1 + $0x40] sm:$0xff]  ;;  %vm459_vm1 = vcmask 1041409   ;;  %vm462_vm2 = vcmask 1042434   ;;  %s1397_s14 = smov 16  }
   0x8   :  { %v1478_v28 = vld [vmem:[%s2049_s1 + $0x18] sm:$0xff]  ;;  %v1491_v38 = vld [vmem:[%s2049_s1 + $0x28] sm:$0xff]  ;;  %v1496_v39 = vld [vmem:[%s2049_s1 + $0x20] sm:$0xff]  ;;  %vm465_vm3 = vcmask 1043459   ;;  %vm468_vm4 = vcmask 1044484   ;;  %vm471_vm5 = vcmask 1045509  }
   0x9   :  { %v66_v11 = vrot.slane %v50_v8, %v49_v7  ;;  %v73_v12 = vrot.slane %v57_v10, %v49_v7  ;;  %v58_v13 = vcombine.high %v50_v8, %v50_v8  ;;  %v59_v22 = vcombine.high %v57_v10, %v57_v10  ;;  %v1506_v46 = vld [vmem:[%s2049_s1 + $0x58] sm:$0xff]  ;;  %v1511_v47 = vld [vmem:[%s2049_s1 + $0x50] sm:$0xff]  ;;  %v1536_v61 = vld [vmem:[%s2049_s1 + $0x68] sm:$0xff]  ;;  %s1398_s15 = smov [#allocation4]  }
   0xa   :  { %v1521_v54 = vld [vmem:[%s2049_s1 + $0x38] sm:$0xff]  ;;  %v1526_v55 = vld [vmem:[%s2049_s1 + $0x30] sm:$0xff]  ;;  %v1541_v63 = vld [vmem:[%s2049_s1 + $0x60] sm:$0xff]  ;;  %vm474_vm6 = vcmask 1046534   ;;  %vm477_vm7 = vcmask 1047559   ;;  %vm1091_vm10 = vcmask 1043456  }
   0xb   :  { %v95_v17 = vrot.slane %v66_v11, %v1442_v9  ;;  %v111_v18 = vrot.slane %v73_v12, %v1442_v9  ;;  %v80_v19 = vrot.slane %v58_v13, %v49_v7  ;;  %v88_v21 = vcombine.high %v66_v11, %v66_v11  ;;  %v1551_v6 = vld [vmem:[%s2049_s1 + $0x78] sm:$0xff]  ;;  %s1160_s16 = sshll.u32 %s1398_s15, 4  ;;  %s1161_s16 = int_to_ptr.vmem [resolvable:$true] %s1160_s16 }
   0xc   :  { %v87_v33 = vrot.slane %v59_v22, %v49_v7  ;;  %v89_v49 = vcombine.high %v73_v12, %v73_v12  ;;  %v1556_v7 = vld [vmem:[%s2049_s1 + $0x70] sm:$0xff]  ;;  %vm1054_vm11 = vcmask 130048   ;;  %vm1087_vm12 = vcmask 195584   ;;  %s1339_s17 = scalar_lea.vmem %s1161_s16, 128  ;;  %p1344_p1 = scmp.lt.s32.totalorder %s1161_s16, %s1161_s16 }
   0xd   :  { %v132_v23 = vmul.f32 %v95_v17, %v1447_v14  ;;  %v141_v24 = vmul.f32 %v111_v18, %v1452_v15  ;;  %v133_v25 = vmul.f32 %v95_v17, %v1457_v16  ;;  %v99_v26 = vrot.slane %v80_v19, %v1442_v9  ;;  %p1340_p0 = scmp.ne.s32.totalorder %s1161_s16, %s1339_s17  ;;  %p1345_p2 = scmp.lt.s32.totalorder %s1339_s17, %s1339_s17 }
   0xe   :  { %v140_v32 = vmul.f32 %v111_v18, %v1473_v27  ;;  %v103_v37 = vrot.slane %v88_v21, %v1442_v9  ;;  %v115_v40 = vrot.slane %v87_v33, %v1442_v9  ;;  %v90_v41 = vcombine.high %v80_v19, %v80_v19 }
   0xf   :  { %v149_v29 = vsel %vm148_vm0, %v132_v23, 0.0  ;;  %v176_v30 = vsel %vm148_vm0, %v141_v24, 0.0  ;;  %v134_v31 = vmul.f32 %v99_v26, %v1464_v20  ;;  %v152_v34 = vsel %vm148_vm0, %v133_v25, 0.0  ;;  %p1346_p3 = por %p1345_p2, %p1344_p1 }
  0x10   :  { %150 = vadd.xlane.f32.xlu0 %v149_v29  ;;  %177 = vadd.xlane.f32.xlu1 %v176_v30  ;;  %v135_v36 = vmul.f32 %v99_v26, %v1478_v28  ;;  %v173_v43 = vsel %vm148_vm0, %v140_v32, 0.0  ;;  %v137_v44 = vmul.f32 %v103_v37, %v1491_v38  ;;  %v136_v45 = vmul.f32 %v103_v37, %v1496_v39 }
  0x11   :  { %v155_v35 = vsel %vm148_vm0, %v134_v31, 0.0  ;;  %v143_v48 = vmul.f32 %v115_v40, %v1506_v46  ;;  %v142_v52 = vmul.f32 %v115_v40, %v1511_v47  ;;  %v107_v53 = vrot.slane %v90_v41, %v1442_v9  ;;  %p1347_p4 = pnand %p1346_p3, %p1340_p0 }
  0x12   :  { %v158_v42 = vsel %vm148_vm0, %v135_v36, 0.0  ;;  %v164_v50 = vsel %vm148_vm0, %v137_v44, 0.0  ;;  %v161_v51 = vsel %vm148_vm0, %v136_v45, 0.0  ;;  %v119_v57 = vrot.slane %v89_v49, %v1442_v9 }
  0x13   :  { %v182_v56 = vsel %vm148_vm0, %v143_v48, 0.0  ;;  %v179_v58 = vsel %vm148_vm0, %v142_v52, 0.0  ;;  %v139_v59 = vmul.f32 %v107_v53, %v1521_v54  ;;  %v138_v60 = vmul.f32 %v107_v53, %v1526_v55 }
  0x14   :  { %153 = vadd.xlane.f32.xlu0 %v152_v34  ;;  %156 = vadd.xlane.f32.xlu1 %v155_v35  ;;  %v91_v62 = vcombine.high %v87_v33, %v87_v33  ;;  %v145_v0 = vmul.f32 %v119_v57, %v1536_v61  ;;  %v144_v3 = vmul.f32 %v119_v57, %v1541_v63  ;;  %v1388_v18 = vmov 0  }
  0x15   :  { %v170_v1 = vsel %vm148_vm0, %v139_v59, 0.0  ;;  %v167_v2 = vsel %vm148_vm0, %v138_v60, 0.0  ;;  %1207 = vset.pattern.permute.xlu1 %v1388_v18  ;;  %1216 = vset.pattern.permute.xlu0 %v1388_v18 }
  0x16   :  { %v123_v5 = vrot.slane %v91_v62, %v1442_v9  ;;  %v188_v8 = vsel %vm148_vm0, %v145_v0, 0.0  ;;  %v185_v10 = vsel %vm148_vm0, %v144_v3, 0.0  ;;  %1130 = vmatprep.mubr.bf16.mxu0 %v1388_v18 }
  0x18   :  { %159 = vadd.xlane.f32.xlu1 %v158_v42  ;;  %174 = vadd.xlane.f32.xlu0 %v173_v43  ;;  %v147_v11 = vmul.f32 %v123_v5, %v1551_v6  ;;  %v146_v12 = vmul.f32 %v123_v5, %v1556_v7 }
  0x1a   :  { %v194_v13 = vsel %vm148_vm0, %v147_v11, 0.0  ;;  %v191_v17 = vsel %vm148_vm0, %v146_v12, 0.0 }
  0x1c   :  { %165 = vadd.xlane.f32.xlu1 %v164_v50  ;;  %162 = vadd.xlane.f32.xlu0 %v161_v51 }
  0x20   :  { %183 = vadd.xlane.f32.xlu1 %v182_v56  ;;  %180 = vadd.xlane.f32.xlu0 %v179_v58 }
  0x24   :  { %171 = vadd.xlane.f32.xlu1 %v170_v1  ;;  %168 = vadd.xlane.f32.xlu0 %v167_v2 }
  0x28   :  { %189 = vadd.xlane.f32.xlu1 %v188_v8  ;;  %186 = vadd.xlane.f32.xlu0 %v185_v10 }
  0x2c   :  { %195 = vadd.xlane.f32.xlu1 %v194_v13  ;;  %192 = vadd.xlane.f32.xlu0 %v191_v17 }
  0x9d   :  { %v151_v19 = vpop.xlane.xlu0 %150  ;;  %v178_v21 = vpop.xlane.xlu1 %177 }
  0x9e   :  { %v197_v22 = vsub.f32 0.0, %v151_v19  ;;  %v206_v23 = vsub.f32 0.0, %v178_v21 }
  0xa0   :  { %v1172_v24 = vmul.f32 -1.442695, %v197_v22  ;;  %v1181_v25 = vmul.f32 -1.442695, %v206_v23 }
  0xa1   :  { %v154_v26 = vpop.xlane.xlu0 %153  ;;  %v157_v29 = vpop.xlane.xlu1 %156 }
  0xa2   :  { %1256 = vpow2.f32 %v1172_v24  ;;  %v198_v30 = vsub.f32 0.0, %v154_v26  ;;  %v199_v31 = vsub.f32 0.0, %v157_v29 }
  0xa3   :  { %1258 = vpow2.f32 %v1181_v25 }
  0xa4   :  { %v1173_v32 = vmul.f32 -1.442695, %v198_v30  ;;  %v1174_v33 = vmul.f32 -1.442695, %v199_v31 }
  0xa5   :  { %v160_v34 = vpop.xlane.xlu1 %159  ;;  %v175_v35 = vpop.xlane.xlu0 %174 }
  0xa6   :  { %1260 = vpow2.f32 %v1173_v32  ;;  %v200_v36 = vsub.f32 0.0, %v160_v34  ;;  %v205_v37 = vsub.f32 0.0, %v175_v35 }
  0xa7   :  { %1262 = vpow2.f32 %v1174_v33 }
  0xa8   :  { %v1175_v40 = vmul.f32 -1.442695, %v200_v36  ;;  %v1180_v41 = vmul.f32 -1.442695, %v205_v37 }
  0xa9   :  { %v166_v42 = vpop.xlane.xlu1 %165  ;;  %v163_v43 = vpop.xlane.xlu0 %162 }
  0xaa   :  { %1264 = vpow2.f32 %v1175_v40  ;;  %v202_v44 = vsub.f32 0.0, %v166_v42  ;;  %v201_v45 = vsub.f32 0.0, %v163_v43 }
  0xab   :  { %1266 = vpow2.f32 %v1180_v41 }
  0xac   :  { %v1257_v48 = vpop.eup %1256  ;;  %v1177_v49 = vmul.f32 -1.442695, %v202_v44  ;;  %v1176_v52 = vmul.f32 -1.442695, %v201_v45 }
  0xad   :  { %v1259_v50 = vpop.eup %1258  ;;  %v261_v51 = vadd.f32 1.0, %v1257_v48  ;;  %v184_v53 = vpop.xlane.xlu1 %183 }
  0xae   :  { %v181_v56 = vpop.xlane.xlu0 %180  ;;  %v270_v57 = vadd.f32 1.0, %v1259_v50  ;;  %1268 = vpow2.f32 %v1177_v49  ;;  %v208_v58 = vsub.f32 0.0, %v184_v53 }
  0xaf   :  { %v207_v59 = vsub.f32 0.0, %v181_v56  ;;  %1270 = vrcp.f32 %v261_v51 }
  0xb0   :  { %v1261_v60 = vpop.eup %1260  ;;  %1272 = vrcp.f32 %v270_v57  ;;  %v1183_v62 = vmul.f32 -1.442695, %v208_v58 }
  0xb1   :  { %v1263_v0 = vpop.eup %1262  ;;  %v262_v1 = vadd.f32 1.0, %v1261_v60  ;;  %1274 = vpow2.f32 %v1176_v52  ;;  %v1182_v2 = vmul.f32 -1.442695, %v207_v59 }
  0xb2   :  { %v263_v3 = vadd.f32 1.0, %v1263_v0  ;;  %1276 = vpow2.f32 %v1183_v62 }
  0xb3   :  { %1278 = vrcp.f32 %v262_v1 }
  0xb4   :  { %v1265_v5 = vpop.eup %1264  ;;  %1280 = vrcp.f32 %v263_v3 }
  0xb5   :  { %v1267_v8 = vpop.eup %1266  ;;  %v264_v10 = vadd.f32 1.0, %v1265_v5  ;;  %1282 = vpow2.f32 %v1182_v2 }
  0xb6   :  { %v269_v11 = vadd.f32 1.0, %v1267_v8 }
  0xb7   :  { %1284 = vrcp.f32 %v264_v10 }
  0xb8   :  { %v1269_v12 = vpop.eup %1268  ;;  %1286 = vrcp.f32 %v269_v11 }
  0xb9   :  { %v1271_v13 = vpop.eup %1270  ;;  %v266_v17 = vadd.f32 1.0, %v1269_v12 }
  0xba   :  { %v1273_v19 = vpop.eup %1272  ;;  %v309_v23 = vmul.f32 %v1271_v13, %v1447_v14 }
  0xbb   :  { %v1275_v21 = vpop.eup %1274  ;;  %1288 = vrcp.f32 %v266_v17  ;;  %v318_v32 = vmul.f32 %v1273_v19, %v1452_v15 }
  0xbc   :  { %v1277_v22 = vpop.eup %1276  ;;  %v265_v24 = vadd.f32 1.0, %v1275_v21  ;;  %v325_v34 = vsel %vm148_vm0, %v309_v23, 0.0 }
  0xbd   :  { %v1279_v25 = vpop.eup %1278  ;;  %v272_v26 = vadd.f32 1.0, %v1277_v22 }
  0xbe   :  { %v1281_v29 = vpop.eup %1280  ;;  %v310_v30 = vmul.f32 %v1279_v25, %v1457_v16  ;;  %1290 = vrcp.f32 %v265_v24  ;;  %v362_v16 = vsel %vm148_vm0, %v318_v32, 0.0  ;;  %v1389_v32 = vmov 1  }
  0xbf   :  { %v1283_v31 = vpop.eup %1282  ;;  %v311_v33 = vmul.f32 %v1281_v29, %v1464_v20  ;;  %1292 = vrcp.f32 %v272_v26 }
  0xc0   :  { %v326_v35 = vsel %vm148_vm0, %v310_v30, 0.0  ;;  %v271_v36 = vadd.f32 1.0, %v1283_v31  ;;  %v172_v31 = vpop.xlane.xlu1 %171 }
  0xc1   :  { %v1285_v37 = vpop.eup %1284  ;;  %v327_v14 = vadd.f32 %v326_v35, %v325_v34  ;;  %v334_v41 = vsel %vm148_vm0, %v311_v33, 0.0  ;;  %v169_v34 = vpop.xlane.xlu0 %168 }
  0xc2   :  { %v1287_v40 = vpop.eup %1286  ;;  %v312_v42 = vmul.f32 %v1285_v37, %v1478_v28  ;;  %1294 = vrcp.f32 %v271_v36 }
  0xc3   :  { %v328_v43 = vrot.slane %v327_v14, 4  ;;  %v317_v15 = vmul.f32 %v1287_v40, %v1473_v27  ;;  %v1390_v40 = vmov 2  }
  0xc4   :  { %v335_v20 = vsel %vm148_vm0, %v312_v42, 0.0 }
  0xc5   :  { %v1289_v44 = vpop.eup %1288  ;;  %v329_v45 = vadd.f32 %v328_v43, %v327_v14  ;;  %v336_v48 = vadd.f32 %v335_v20, %v334_v41  ;;  %v361_v49 = vsel %vm148_vm0, %v317_v15, 0.0  ;;  %v190_v14 = vpop.xlane.xlu1 %189 }
  0xc6   :  { %v363_v50 = vadd.f32 %v362_v16, %v361_v49  ;;  %v314_v51 = vmul.f32 %v1289_v44, %v1491_v38  ;;  %v187_v41 = vpop.xlane.xlu0 %186  ;;  %v210_v42 = vsub.f32 0.0, %v190_v14  ;;  %v203_v49 = vsub.f32 0.0, %v169_v34 }
  0xc7   :  { %v330_v52 = vrot.slane %v329_v45, 2  ;;  %v337_v58 = vrot.slane %v336_v48, 4  ;;  %v209_v43 = vsub.f32 0.0, %v187_v41 }
  0xc8   :  { %v1291_v53 = vpop.eup %1290  ;;  %v364_v56 = vrot.slane %v363_v50, 4  ;;  %v344_v59 = vsel %vm148_vm0, %v314_v51, 0.0  ;;  %v1185_v15 = vmul.f32 -1.442695, %v210_v42  ;;  %v1178_v51 = vmul.f32 -1.442695, %v203_v49 }
  0xc9   :  { %v1293_v28 = vpop.eup %1292  ;;  %v331_v57 = vadd.f32 %v330_v52, %v329_v45  ;;  %v313_v27 = vmul.f32 %v1291_v53, %v1496_v39  ;;  %v338_v8 = vadd.f32 %v337_v58, %v336_v48  ;;  %v1184_v44 = vmul.f32 -1.442695, %v209_v43  ;;  %v196_v53 = vpop.xlane.xlu1 %195 }
  0xca   :  { %v365_v60 = vadd.f32 %v364_v56, %v363_v50  ;;  %v320_v62 = vmul.f32 %v1293_v28, %v1506_v46  ;;  %1296 = vpow2.f32 %v1185_v15  ;;  %v1391_v45 = vmov 3  }
  0xcb   :  { %v332_v0 = vrot.slane %v331_v57, 1  ;;  %v343_v1 = vsel %vm148_vm0, %v313_v27, 0.0  ;;  %v339_v21 = vrot.slane %v338_v8, 2  ;;  %1298 = vpow2.f32 %v1184_v44 }
  0xcc   :  { %v1295_v2 = vpop.eup %1294  ;;  %v366_v3 = vrot.slane %v365_v60, 2  ;;  %v345_v5 = vadd.f32 %v344_v59, %v343_v1  ;;  %v371_v10 = vsel %vm148_vm0, %v320_v62, 0.0  ;;  %v204_v48 = vsub.f32 0.0, %v172_v31 }
  0xcd   :  { %v1584_v38 = vadd.f32 %v332_v0, %v331_v57  ;;  %v319_v11 = vmul.f32 %v1295_v2, %v1511_v47  ;;  %v340_v26 = vadd.f32 %v339_v21, %v338_v8  ;;  %v1392_v56 = vmov 4   ;;  %v193_v57 = vpop.xlane.xlu0 %192 }
  0xce   :  { %v367_v12 = vadd.f32 %v366_v3, %v365_v60  ;;  %v346_v13 = vrot.slane %v345_v5, 4  ;;  %v1179_v50 = vmul.f32 -1.442695, %v204_v48  ;;  %v212_v59 = vsub.f32 0.0, %v196_v53 }
  0xcf   :  { %v370_v39 = vsel %vm148_vm0, %v319_v11, 0.0  ;;  %400 = vperm.xlu1 %1207, %v1584_v38   ;;  %v341_v33 = vrot.slane %v340_v26, 1  ;;  %v211_v60 = vsub.f32 0.0, %v193_v57  ;;  %v1393_v1 = vmov 5  }
  0xd0   :  { %v368_v46 = vrot.slane %v367_v12, 1  ;;  %v347_v17 = vadd.f32 %v346_v13, %v345_v5  ;;  %v372_v19 = vadd.f32 %v371_v10, %v370_v39  ;;  %1300 = vpow2.f32 %v1179_v50 }
  0xd1   :  { %v1598_v36 = vadd.f32 %v341_v33, %v340_v26  ;;  %1302 = vpow2.f32 %v1178_v51  ;;  %v1187_v62 = vmul.f32 -1.442695, %v212_v59  ;;  %v1186_v0 = vmul.f32 -1.442695, %v211_v60 }
  0xd2   :  { %v1590_v22 = vadd.f32 %v368_v46, %v367_v12  ;;  %v348_v23 = vrot.slane %v347_v17, 2  ;;  %v373_v24 = vrot.slane %v372_v19, 4  ;;  %v1394_v12 = vmov 6  }
  0xd4   :  { %v349_v25 = vadd.f32 %v348_v23, %v347_v17  ;;  %420 = vperm.xlu1 %1207, %v1590_v22   ;;  %v374_v47 = vadd.f32 %v373_v24, %v372_v19  ;;  %v1297_v52 = vpop.eup %1296 }
  0xd5   :  { %v1299_v28 = vpop.eup %1298  ;;  %v274_v58 = vadd.f32 1.0, %v1297_v52 }
  0xd6   :  { %v350_v29 = vrot.slane %v349_v25, 1  ;;  %v375_v35 = vrot.slane %v374_v47, 2  ;;  %v273_v27 = vadd.f32 1.0, %v1299_v28 }
  0xd7   :  { %1304 = vrcp.f32 %v274_v58 }
  0xd8   :  { %v1593_v30 = vadd.f32 %v350_v29, %v349_v25  ;;  %1208 = vset.pattern.permute.xlu1 %v1389_v32  ;;  %v376_v37 = vadd.f32 %v375_v35, %v374_v47  ;;  %1306 = vrcp.f32 %v273_v27  ;;  %v1395_v25 = vmov 7  }
  0xd9   :  { %482 = vperm.xlu1 %1208, %v1584_v38   ;;  %1308 = vpow2.f32 %v1187_v62  ;;  %v958_v27 = vmul.f32 %v1598_v36, %v1598_v36  ;;  %v957_v62 = vmul.f32 %v1584_v38, %v1584_v38 }
  0xda   :  { %410 = vperm.xlu0 %1216, %v1593_v30   ;;  %v377_v16 = vrot.slane %v376_v37, 1  ;;  %v1301_v2 = vpop.eup %1300  ;;  %1310 = vpow2.f32 %v1186_v0  ;;  %v959_v60 = vmul.f32 %v1593_v30, %v1593_v30 }
  0xdb   :  { %v1303_v3 = vpop.eup %1302  ;;  %v268_v5 = vadd.f32 1.0, %v1301_v2 }
  0xdc   :  { %v1606_v20 = vadd.f32 %v377_v16, %v376_v37  ;;  %v267_v8 = vadd.f32 1.0, %v1303_v3  ;;  %v973_v3 = vsel %vm459_vm1, %v958_v27, %v957_v62  ;;  %v719_v62 = vsub.s32 4, %v1438_v4 }
  0xdd   :  { %498 = vperm.xlu1 %1208, %v1590_v22   ;;  %1312 = vrcp.f32 %v268_v5  ;;  %v974_v5 = vsel %vm462_vm2, %v959_v60, %v973_v3 }
  0xde   :  { %1219 = vset.pattern.permute.xlu0 %v1390_v40  ;;  %1314 = vrcp.f32 %v267_v8 }
  0xdf   :  { %554 = vperm.xlu0 %1219, %v1598_v36  }
  0xe1   :  { %1209 = vset.pattern.permute.xlu1 %v1390_v40  ;;  %v1305_v10 = vpop.eup %1304 }
  0xe2   :  { %550 = vperm.xlu1 %1209, %v1584_v38   ;;  %v1307_v11 = vpop.eup %1306  ;;  %v322_v39 = vmul.f32 %v1305_v10, %v1536_v61  ;;  %v961_v10 = vmul.f32 %v1590_v22, %v1590_v22 }
  0xe3   :  { %558 = vperm.xlu0 %1219, %v1593_v30   ;;  %v1309_v13 = vpop.eup %1308  ;;  %v321_v46 = vmul.f32 %v1307_v11, %v1541_v63 }
  0xe4   :  { %v1311_v17 = vpop.eup %1310  ;;  %v276_v19 = vadd.f32 1.0, %v1309_v13  ;;  %v380_v21 = vsel %vm148_vm0, %v322_v39, 0.0  ;;  %v962_v13 = vmul.f32 %v1606_v20, %v1606_v20 }
  0xe5   :  { %v379_v23 = vsel %vm148_vm0, %v321_v46, 0.0  ;;  %v275_v24 = vadd.f32 1.0, %v1311_v17 }
  0xe6   :  { %566 = vperm.xlu1 %1209, %v1590_v22   ;;  %v381_v63 = vadd.f32 %v380_v21, %v379_v23  ;;  %1316 = vrcp.f32 %v276_v19 }
  0xe7   :  { %1220 = vset.pattern.permute.xlu0 %v1389_v32  ;;  %v1313_v61 = vpop.eup %1312  ;;  %1318 = vrcp.f32 %v275_v24 }
  0xe8   :  { %502 = vperm.xlu0 %1220, %v1606_v20   ;;  %v1315_v26 = vpop.eup %1314  ;;  %v316_v29 = vmul.f32 %v1313_v61, %v1521_v54  ;;  %v382_v31 = vrot.slane %v381_v63, 4 }
  0xe9   :  { %v315_v47 = vmul.f32 %v1315_v26, %v1526_v55  ;;  %v583_v26 = vsub.s32 2, %v1438_v4 }
  0xea   :  { %1210 = vset.pattern.permute.xlu1 %v1391_v45  ;;  %v353_v33 = vsel %vm148_vm0, %v316_v29, 0.0  ;;  %v383_v35 = vadd.f32 %v382_v31, %v381_v63  ;;  %v1729_v31 = vld [vmem:[%s2050_s2] sm:$0xff] }
  0xeb   :  { %618 = vperm.xlu1 %1210, %v1584_v38   ;;  %v352_v34 = vsel %vm148_vm0, %v315_v47, 0.0 }
  0xec   :  { %1221 = vset.pattern.permute.xlu0 %v1391_v45  ;;  %v354_v14 = vadd.f32 %v353_v33, %v352_v34  ;;  %v384_v55 = vrot.slane %v383_v35, 2 }
  0xed   :  { %622 = vperm.xlu0 %1221, %v1598_v36  }
  0xee   :  { %v355_v16 = vrot.slane %v354_v14, 4  ;;  %v385_v43 = vadd.f32 %v384_v55, %v383_v35 }
  0xef   :  { %634 = vperm.xlu1 %1210, %v1590_v22  }
  0xf0   :  { %v1317_v37 = vpop.eup %1316  ;;  %v356_v48 = vadd.f32 %v355_v16, %v354_v14  ;;  %v386_v49 = vrot.slane %v385_v43, 1 }
  0xf1   :  { %626 = vperm.xlu0 %1221, %v1593_v30   ;;  %v1319_v54 = vpop.eup %1318  ;;  %v324_v41 = vmul.f32 %v1317_v37, %v1551_v6 }
  0xf2   :  { %v323_v42 = vmul.f32 %v1319_v54, %v1556_v7  ;;  %v357_v6 = vrot.slane %v356_v48, 2  ;;  %v1667_v7 = vadd.f32 %v386_v49, %v385_v43  ;;  %v651_v43 = vsub.s32 3, %v1438_v4 }
  0xf3   :  { %1211 = vset.pattern.permute.xlu1 %v1392_v56  ;;  %v389_v15 = vsel %vm148_vm0, %v324_v41, 0.0 }
  0xf4   :  { %686 = vperm.xlu1 %1211, %v1584_v38   ;;  %v388_v44 = vsel %vm148_vm0, %v323_v42, 0.0  ;;  %v358_v52 = vadd.f32 %v357_v6, %v356_v48  ;;  %v963_v46 = vmul.f32 %v1667_v7, %v1667_v7  ;;  %v1759_v48 = vrot.slane %v1729_v31, %v651_v43 }
  0xf5   :  { %1223 = vset.pattern.permute.xlu0 %v1390_v40  ;;  %v390_v50 = vadd.f32 %v389_v15, %v388_v44 }
  0xf6   :  { %570 = vperm.xlu0 %1223, %v1606_v20   ;;  %v359_v28 = vrot.slane %v358_v52, 1 }
  0xf7   :  { %v391_v51 = vrot.slane %v390_v50, 4 }
  0xf8   :  { %702 = vperm.xlu1 %1211, %v1590_v22   ;;  %v1673_v58 = vadd.f32 %v359_v28, %v358_v52 }
  0xf9   :  { %v392_v53 = vadd.f32 %v391_v51, %v390_v50 }
  0xfa   :  { %1224 = vset.pattern.permute.xlu0 %v1392_v56  ;;  %v960_v0 = vmul.f32 %v1673_v58, %v1673_v58 }
  0xfb   :  { %690 = vperm.xlu0 %1224, %v1598_v36   ;;  %v393_v57 = vrot.slane %v392_v53, 2 }
  0xfc   :  { %1212 = vset.pattern.permute.xlu1 %v1393_v1  ;;  %v975_v8 = vsel %vm465_vm3, %v960_v0, %v974_v5 }
  0xfd   :  { %754 = vperm.xlu1 %1212, %v1584_v38   ;;  %v394_v59 = vadd.f32 %v393_v57, %v392_v53  ;;  %v976_v39 = vsel %vm468_vm4, %v961_v10, %v975_v8 }
  0xfe   :  { %v977_v19 = vsel %vm471_vm5, %v962_v13, %v976_v39 }
  0xff   :  { %694 = vperm.xlu0 %1224, %v1593_v30   ;;  %v395_v2 = vrot.slane %v394_v59, 1  ;;  %v978_v21 = vsel %vm474_vm6, %v963_v46, %v977_v19 }
 0x101   :  { %770 = vperm.xlu1 %1212, %v1590_v22   ;;  %v1692_v11 = vadd.f32 %v395_v2, %v394_v59  ;;  %v1783_v2 = vrot.slane %v1729_v31, %v719_v62 }
 0x103   :  { %1226 = vset.pattern.permute.xlu0 %v1391_v45  ;;  %v964_v17 = vmul.f32 %v1692_v11, %v1692_v11 }
 0x104   :  { %638 = vperm.xlu0 %1226, %v1606_v20  }
 0x105   :  { %1213 = vset.pattern.permute.xlu1 %v1394_v12  ;;  %v979_v23 = vsel %vm477_vm7, %v964_v17, %v978_v21  ;;  %v787_v21 = vsub.s32 5, %v1438_v4 }
 0x106   :  { %822 = vperm.xlu1 %1213, %v1584_v38   ;;  %v981_v24 = vsel %vm148_vm0, %v979_v23, 0.0 }
 0x108   :  { %1227 = vset.pattern.permute.xlu0 %v1393_v1 }
 0x109   :  { %758 = vperm.xlu0 %1227, %v1598_v36  }
 0x10a   :  { %838 = vperm.xlu1 %1213, %v1590_v22  }
 0x10d   :  { %762 = vperm.xlu0 %1227, %v1593_v30  }
 0x10e   :  { %1214 = vset.pattern.permute.xlu1 %v1395_v25 }
 0x10f   :  { %890 = vperm.xlu1 %1214, %v1584_v38  }
 0x111   :  { %1229 = vset.pattern.permute.xlu0 %v1392_v56 }
 0x112   :  { %706 = vperm.xlu0 %1229, %v1606_v20  }
 0x113   :  { %906 = vperm.xlu1 %1214, %v1590_v22  }
 0x116   :  { %1230 = vset.pattern.permute.xlu0 %v1394_v12 }
 0x117   :  { %826 = vperm.xlu0 %1230, %v1598_v36   ;;  %1215 = vset.pattern.permute.xlu1 %v1388_v18 }
 0x118   :  { %405 = vperm.xlu1 %1215, %v1598_v36  }
 0x11b   :  { %830 = vperm.xlu0 %1230, %v1593_v30  }
 0x11c   :  { %1217 = vset.pattern.permute.xlu1 %v1389_v32 }
 0x11d   :  { %486 = vperm.xlu1 %1217, %v1598_v36  }
 0x11f   :  { %1232 = vset.pattern.permute.xlu0 %v1393_v1 }
 0x120   :  { %774 = vperm.xlu0 %1232, %v1606_v20  }
 0x121   :  { %490 = vperm.xlu1 %1217, %v1593_v30  }
 0x124   :  { %1234 = vset.pattern.permute.xlu0 %v1394_v12 }
 0x125   :  { %842 = vperm.xlu0 %1234, %v1606_v20   ;;  %1218 = vset.pattern.permute.xlu1 %v1388_v18 }
 0x126   :  { %425 = vperm.xlu1 %1218, %v1606_v20  }
 0x129   :  { %846 = vperm.xlu0 %1234, %v1667_v7  }
 0x12a   :  { %430 = vperm.xlu1 %1218, %v1667_v7  }
 0x12e   :  { %1222 = vset.pattern.permute.xlu1 %v1389_v32 }
 0x12f   :  { %506 = vperm.xlu1 %1222, %v1667_v7  }
 0x133   :  { %1225 = vset.pattern.permute.xlu1 %v1390_v40 }
 0x134   :  { %574 = vperm.xlu1 %1225, %v1667_v7  }
 0x138   :  { %1228 = vset.pattern.permute.xlu1 %v1391_v45 }
 0x139   :  { %642 = vperm.xlu1 %1228, %v1667_v7  }
 0x13d   :  { %1231 = vset.pattern.permute.xlu1 %v1392_v56 }
 0x13e   :  { %710 = vperm.xlu1 %1231, %v1667_v7  }
 0x142   :  { %1233 = vset.pattern.permute.xlu1 %v1393_v1 }
 0x143   :  { %778 = vperm.xlu1 %1233, %v1667_v7  }
 0x147   :  { %1235 = vset.pattern.permute.xlu1 %v1388_v18 }
 0x148   :  { %982 = vadd.xlane.f32.xlu0 %v981_v24  ;;  %415 = vperm.xlu1 %1235, %v1673_v58  }
 0x14c   :  { %1236 = vset.pattern.permute.xlu1 %v1389_v32 }
 0x14d   :  { %494 = vperm.xlu1 %1236, %v1673_v58  }
 0x14e   :  { %v1713_v61 = vpop.permute.xlu1 %400 }
 0x151   :  { %1237 = vset.pattern.permute.xlu1 %v1388_v18  ;;  %v1733_v18 = vrot.slane %v1729_v31, %v583_v26  ;;  %v1804_v26 = vrot.slane %v1729_v31, %v787_v21 }
 0x152   :  { %435 = vperm.xlu1 %1237, %v1692_v11  }
 0x153   :  { %v1717_v63 = vpop.permute.xlu1 %420 }
 0x156   :  { %1238 = vset.pattern.permute.xlu1 %v1390_v40 }
 0x157   :  { %562 = vperm.xlu1 %1238, %v1673_v58  }
 0x158   :  { %v1722_v29 = vpop.permute.xlu1 %482 }
 0x159   :  { %v1724_v47 = vpop.permute.xlu0 %410 }
 0x15b   :  { %1239 = vset.pattern.permute.xlu1 %v1389_v32 }
 0x15c   :  { %v1735_v33 = vpop.permute.xlu1 %498  ;;  %510 = vperm.xlu1 %1239, %v1692_v11  }
 0x15e   :  { %850 = vperm.xlu0 %1234, %v1692_v11   ;;  %v555_v34 = vpop.permute.xlu0 %554 }
 0x15f   :  { %v586_v35 = vmul.f32 %v1733_v18, %v555_v34 }
 0x160   :  { %1240 = vset.pattern.permute.xlu1 %v1391_v45 }
 0x161   :  { %v601_v37 = vrot.slane %v586_v35, 7  ;;  %v551_v54 = vpop.permute.xlu1 %550  ;;  %630 = vperm.xlu1 %1240, %v1673_v58  }
 0x162   :  { %1249 = vset.pattern.permute.xlu0 %v1395_v25  ;;  %v559_v32 = vpop.permute.xlu0 %558  ;;  %v585_v14 = vmul.f32 %v1733_v18, %v551_v54 }
 0x163   :  { %v587_v55 = vmul.f32 %v1733_v18, %v559_v32  ;;  %894 = vperm.xlu0 %1249, %v1598_v36  }
 0x164   :  { %v602_v41 = vsel %vm459_vm1, %v601_v37, %v585_v14 }
 0x165   :  { %v603_v42 = vrot.slane %v587_v55, 6  ;;  %v1747_v16 = vpop.permute.xlu1 %566  ;;  %1241 = vset.pattern.permute.xlu1 %v1390_v40 }
 0x166   :  { %578 = vperm.xlu1 %1241, %v1692_v11  }
 0x167   :  { %v1753_v15 = vsel %vm462_vm2, %v603_v42, %v602_v41  ;;  %898 = vperm.xlu0 %1249, %v1593_v30   ;;  %v1756_v44 = vpop.permute.xlu0 %502 }
 0x16a   :  { %v619_v49 = vpop.permute.xlu1 %618  ;;  %1242 = vset.pattern.permute.xlu1 %v1392_v56 }
 0x16b   :  { %914 = vperm.xlu0 %1249, %v1667_v7   ;;  %698 = vperm.xlu1 %1242, %v1673_v58   ;;  %v653_v51 = vmul.f32 %v1759_v48, %v619_v49 }
 0x16c   :  { %v623_v40 = vpop.permute.xlu0 %622 }
 0x16d   :  { %v654_v50 = vmul.f32 %v1759_v48, %v623_v40 }
 0x16e   :  { %v1765_v6 = vpop.permute.xlu1 %634 }
 0x16f   :  { %v669_v52 = vrot.slane %v654_v50, 7  ;;  %1243 = vset.pattern.permute.xlu1 %v1391_v45  ;;  %v1828_v50 = vrot.slane %v1729_v31, %v1442_v9 }
 0x170   :  { %v627_v53 = vpop.permute.xlu0 %626  ;;  %646 = vperm.xlu1 %1243, %v1692_v11  }
 0x171   :  { %v670_v28 = vsel %vm459_vm1, %v669_v52, %v653_v51  ;;  %v655_v57 = vmul.f32 %v1759_v48, %v627_v53  ;;  %v515_v53 = vsub.s32 1, %v1438_v4 }
 0x173   :  { %v671_v59 = vrot.slane %v655_v57, 6  ;;  %v687_v27 = vpop.permute.xlu1 %686 }
 0x174   :  { %1244 = vset.pattern.permute.xlu1 %v1393_v1  ;;  %v721_v10 = vmul.f32 %v1783_v2, %v687_v27 }
 0x175   :  { %v1774_v60 = vsel %vm462_vm2, %v671_v59, %v670_v28  ;;  %v1777_v0 = vpop.permute.xlu0 %570  ;;  %766 = vperm.xlu1 %1244, %v1673_v58   ;;  %v444_v28 = vmul.f32 %v1828_v50, %v1724_v47 }
 0x177   :  { %v1780_v45 = vpop.permute.xlu1 %702 }
 0x179   :  { %1245 = vset.pattern.permute.xlu1 %v1392_v56 }
 0x17a   :  { %v691_v3 = vpop.permute.xlu0 %690  ;;  %714 = vperm.xlu1 %1245, %v1692_v11  }
 0x17b   :  { %v722_v5 = vmul.f32 %v1783_v2, %v691_v3 }
 0x17c   :  { %v755_v8 = vpop.permute.xlu1 %754 }
 0x17d   :  { %v737_v13 = vrot.slane %v722_v5, 7  ;;  %v789_v54 = vmul.f32 %v1804_v26, %v755_v8  ;;  %v442_v5 = vmul.f32 %v1828_v50, %v1713_v61 }
 0x17e   :  { %v695_v39 = vpop.permute.xlu0 %694  ;;  %1246 = vset.pattern.permute.xlu1 %v1394_v12 }
 0x17f   :  { %v738_v46 = vsel %vm459_vm1, %v737_v13, %v721_v10  ;;  %v723_v17 = vmul.f32 %v1783_v2, %v695_v39  ;;  %834 = vperm.xlu1 %1246, %v1673_v58   ;;  %v1844_v13 = vrot.slane %v1729_v31, %v515_v53  ;;  %v461_v39 = vrot.slane %v444_v28, 6 }
 0x180   :  { %v1793_v19 = vpop.permute.xlu1 %770 }
 0x181   :  { %v739_v56 = vrot.slane %v723_v17, 6 }
 0x183   :  { %v1797_v23 = vsel %vm462_vm2, %v739_v56, %v738_v46  ;;  %v1799_v24 = vpop.permute.xlu0 %638  ;;  %1247 = vset.pattern.permute.xlu1 %v1393_v1 }
 0x184   :  { %782 = vperm.xlu1 %1247, %v1692_v11  }
 0x185   :  { %v823_v12 = vpop.permute.xlu1 %822 }
 0x188   :  { %v759_v34 = vpop.permute.xlu0 %758  ;;  %1248 = vset.pattern.permute.xlu1 %v1395_v25  ;;  %v855_v25 = vsub.s32 6, %v1438_v4 }
 0x189   :  { %v790_v35 = vmul.f32 %v1804_v26, %v759_v34  ;;  %v1808_v37 = vpop.permute.xlu1 %838  ;;  %902 = vperm.xlu1 %1248, %v1673_v58   ;;  %v517_v34 = vmul.f32 %v1844_v13, %v1722_v29 }
 0x18a   :  { %v1831_v51 = vrot.slane %v1729_v31, %v855_v25 }
 0x18b   :  { %v805_v32 = vrot.slane %v790_v35, 7 }
 0x18c   :  { %v763_v14 = vpop.permute.xlu0 %762  ;;  %v857_v62 = vmul.f32 %v1831_v51, %v823_v12 }
 0x18d   :  { %v806_v1 = vsel %vm459_vm1, %v805_v32, %v789_v54  ;;  %v791_v55 = vmul.f32 %v1804_v26, %v763_v14  ;;  %910 = vperm.xlu1 %1248, %v1606_v20  }
 0x18e   :  { %v1815_v41 = vpop.permute.xlu1 %890 }
 0x18f   :  { %v807_v42 = vrot.slane %v791_v55, 6 }
 0x191   :  { %v1819_v43 = vsel %vm462_vm2, %v807_v42, %v806_v1  ;;  %v1821_v49 = vpop.permute.xlu0 %706  ;;  %918 = vperm.xlu1 %1248, %v1692_v11  }
 0x192   :  { %v1824_v40 = vpop.permute.xlu1 %906 }
 0x196   :  { %v827_v52 = vpop.permute.xlu0 %826 }
 0x197   :  { %v858_v57 = vmul.f32 %v1831_v51, %v827_v52  ;;  %v406_v59 = vpop.permute.xlu1 %405 }
 0x198   :  { %v443_v27 = vmul.f32 %v1828_v50, %v406_v59 }
 0x199   :  { %v873_v3 = vrot.slane %v858_v57, 7 }
 0x19a   :  { %v458_v8 = vrot.slane %v443_v27, 7  ;;  %v831_v10 = vpop.permute.xlu0 %830 }
 0x19b   :  { %v874_v47 = vsel %vm459_vm1, %v873_v3, %v857_v62  ;;  %v859_v46 = vmul.f32 %v1831_v51, %v831_v10  ;;  %v446_v3 = vmul.f32 %v1828_v50, %v1717_v63  ;;  %v522_v63 = vmul.f32 %v1844_v13, %v1756_v44 }
 0x19c   :  { %v460_v17 = vsel %vm459_vm1, %v458_v8, %v442_v5  ;;  %v487_v56 = vpop.permute.xlu1 %486 }
 0x19d   :  { %v875_v21 = vrot.slane %v859_v46, 6  ;;  %v518_v12 = vmul.f32 %v1844_v13, %v487_v56  ;;  %v463_v61 = vsel %vm462_vm2, %v461_v39, %v460_v17  ;;  %v467_v46 = vrot.slane %v446_v3, 4 }
 0x19e   :  { %v521_v56 = vmul.f32 %v1844_v13, %v1735_v33  ;;  %v541_v3 = vrot.slane %v522_v63, 3 }
 0x19f   :  { %v1854_v35 = vsel %vm462_vm2, %v875_v21, %v874_v47  ;;  %v533_v54 = vrot.slane %v518_v12, 7  ;;  %v1865_v62 = vpop.permute.xlu0 %774 }
 0x1a0   :  { %v491_v32 = vpop.permute.xlu1 %490  ;;  %v539_v33 = vrot.slane %v521_v56, 4 }
 0x1a1   :  { %v534_v14 = vsel %vm459_vm1, %v533_v54, %v517_v34  ;;  %v519_v1 = vmul.f32 %v1844_v13, %v491_v32 }
 0x1a3   :  { %v535_v55 = vrot.slane %v519_v1, 6 }
 0x1a4   :  { %v1872_v17 = vpop.permute.xlu0 %842 }
 0x1a5   :  { %v536_v42 = vsel %vm462_vm2, %v535_v55, %v534_v14  ;;  %v426_v25 = vpop.permute.xlu1 %425 }
 0x1a6   :  { %v447_v8 = vmul.f32 %v1828_v50, %v426_v25 }
 0x1a8   :  { %v470_v21 = vrot.slane %v447_v8, 3 }
 0x1a9   :  { %v431_v52 = vpop.permute.xlu1 %430 }
 0x1aa   :  { %v448_v39 = vmul.f32 %v1828_v50, %v431_v52 }
 0x1ac   :  { %v473_v54 = vrot.slane %v448_v39, 2 }
 0x1ae   :  { %v507_v28 = vpop.permute.xlu1 %506 }
 0x1af   :  { %v523_v1 = vmul.f32 %v1844_v13, %v507_v28 }
 0x1b1   :  { %v543_v44 = vrot.slane %v523_v1, 2 }
 0x1b3   :  { %v575_v57 = vpop.permute.xlu1 %574 }
 0x1b8   :  { %v1859_v59 = vpop.permute.xlu1 %642 }
 0x1bd   :  { %v1861_v27 = vpop.permute.xlu1 %710 }
 0x1c2   :  { %v1863_v29 = vpop.permute.xlu1 %778 }
 0x1c7   :  { %v416_v5 = vpop.permute.xlu1 %415 }
 0x1c8   :  { %v445_v10 = vmul.f32 %v1828_v50, %v416_v5  ;;  %v1884_v5 = vpop.permute.xlu0 %846 }
 0x1ca   :  { %v464_v47 = vrot.slane %v445_v10, 5 }
 0x1cc   :  { %v466_v12 = vsel %vm465_vm3, %v464_v47, %v463_v61  ;;  %v495_v34 = vpop.permute.xlu1 %494 }
 0x1cd   :  { %v469_v32 = vsel %vm468_vm4, %v467_v46, %v466_v12  ;;  %v520_v14 = vmul.f32 %v1844_v13, %v495_v34  ;;  %v590_v12 = vmul.f32 %v1733_v18, %v1777_v0  ;;  %v591_v34 = vmul.f32 %v1733_v18, %v575_v57 }
 0x1ce   :  { %v472_v55 = vsel %vm471_vm5, %v470_v21, %v469_v32  ;;  %v589_v21 = vmul.f32 %v1733_v18, %v1747_v16 }
 0x1cf   :  { %v537_v25 = vrot.slane %v520_v14, 5  ;;  %v475_v52 = vsel %vm474_vm6, %v473_v54, %v472_v55  ;;  %v609_v14 = vrot.slane %v590_v12, 3  ;;  %v611_v55 = vrot.slane %v591_v34, 2 }
 0x1d0   :  { %v607_v32 = vrot.slane %v589_v21, 4 }
 0x1d1   :  { %v538_v61 = vsel %vm465_vm3, %v537_v25, %v536_v42  ;;  %v436_v8 = vpop.permute.xlu1 %435 }
 0x1d2   :  { %v540_v10 = vsel %vm468_vm4, %v539_v33, %v538_v61  ;;  %v449_v47 = vmul.f32 %v1828_v50, %v436_v8  ;;  %v1907_v61 = vld [vmem:[%s2048_s0] sm:$0xff] }
 0x1d3   :  { %v542_v39 = vsel %vm471_vm5, %v541_v3, %v540_v10 }
 0x1d4   :  { %v544_v28 = vsel %vm474_vm6, %v543_v44, %v542_v39  ;;  %v476_v63 = vrot.slane %v449_v47, 1 }
 0x1d5   :  { %v983_v46 = vpop.xlane.xlu0 %982 }
 0x1d6   :  { %1320 = vrsqrt.f32 %v983_v46  ;;  %v563_v56 = vpop.permute.xlu1 %562  ;;  %v478_v16 = vsel %vm477_vm7, %v476_v63, %v475_v52  ;;  %v657_v52 = vmul.f32 %v1759_v48, %v1765_v6  ;;  %vm986_vm8 = vcmp.eq.f32.partialorder %v983_v46, inf }
 0x1d7   :  { %v588_v42 = vmul.f32 %v1733_v18, %v563_v56  ;;  %v989_v56 = vand.u32 2147483648, %v983_v46  ;;  %vm988_vm9 = vcmp.eq.f32.partialorder %v983_v46, 0.0 }
 0x1d8   :  { %v675_v34 = vrot.slane %v657_v52, 4  ;;  %v659_v52 = vmul.f32 %v1759_v48, %v1859_v59 }
 0x1d9   :  { %v605_v54 = vrot.slane %v588_v42, 5 }
 0x1db   :  { %v606_v50 = vsel %vm465_vm3, %v605_v54, %v1753_v15  ;;  %v511_v1 = vpop.permute.xlu1 %510  ;;  %v480_v15 = vadd.f32 %v1907_v61, %v478_v16 }
 0x1dc   :  { %v608_v25 = vsel %vm468_vm4, %v607_v32, %v606_v50  ;;  %v524_v33 = vmul.f32 %v1844_v13, %v511_v1  ;;  %v658_v13 = vmul.f32 %v1759_v48, %v1799_v24 }
 0x1dd   :  { %v610_v0 = vsel %vm471_vm5, %v609_v14, %v608_v25  ;;  %v726_v25 = vmul.f32 %v1783_v2, %v1821_v49 }
 0x1de   :  { %v545_v3 = vrot.slane %v524_v33, 1  ;;  %v612_v57 = vsel %vm474_vm6, %v611_v55, %v610_v0  ;;  %v677_v54 = vrot.slane %v658_v13, 3 }
 0x1df   :  { %v745_v49 = vrot.slane %v726_v25, 3 }
 0x1e0   :  { %v1321_v8 = vpop.eup %1320  ;;  %v546_v44 = vsel %vm477_vm7, %v545_v3, %v544_v28  ;;  %v631_v10 = vpop.permute.xlu1 %630 }
 0x1e1   :  { %v985_v39 = vmul.f32 %v1321_v8, %v983_v46  ;;  %v548_v47 = vadd.f32 %v546_v44, %v480_v15  ;;  %v656_v21 = vmul.f32 %v1759_v48, %v631_v10 }
 0x1e3   :  { %v987_v12 = vsel %vm986_vm8, %v983_v46, %v985_v39  ;;  %v673_v42 = vrot.slane %v656_v21, 5  ;;  %v725_v46 = vmul.f32 %v1783_v2, %v1780_v45 }
 0x1e4   :  { %v990_v63 = vsel %vm988_vm9, %v989_v56, %v987_v12  ;;  %v679_v56 = vrot.slane %v659_v52, 2 }
 0x1e5   :  { %v991_v32 = vmax.f32 %v990_v63, 1e-12  ;;  %v674_v6 = vsel %vm465_vm3, %v673_v42, %v1774_v60  ;;  %v579_v28 = vpop.permute.xlu1 %578  ;;  %v743_v45 = vrot.slane %v725_v46, 4 }
 0x1e6   :  { %v676_v14 = vsel %vm468_vm4, %v675_v34, %v674_v6  ;;  %v592_v24 = vmul.f32 %v1733_v18, %v579_v28  ;;  %v793_v34 = vmul.f32 %v1804_v26, %v1793_v19  ;;  %v1251_v28 = vld [vmem:[%s2051_s3 + $0x4] ss:$8 sps:$4 sm:$0xff]   ;;  %v1950_v19 = vld [vmem:[%s2051_s3 + $0x10] sm:$0xff] }
 0x1e7   :  { %v678_v50 = vsel %vm471_vm5, %v677_v54, %v676_v14  ;;  %v993_v55 = vrot.slane %v991_v32, 1  ;;  %v994_v16 = vrot.slane %v991_v32, 2  ;;  %v995_v60 = vrot.slane %v991_v32, 3  ;;  %v1253_v14 = vld [vmem:[%s2051_s3] ss:$8 sps:$4 sm:$0xff]   ;;  %1098 = vmatprep.subr.bf16.mxu0 %v1251_v28  ;;  %s1396_s3 = smov 8  }
 0x1e8   :  { %v613_v1 = vrot.slane %v592_v24, 1  ;;  %v996_v8 = vrot.slane %v991_v32, 4  ;;  %1322 = vrcp.f32 %v991_v32  ;;  %v997_v18 = vrot.slane %v991_v32, 5  ;;  %1099 = vmatpush1.bf16.msra.mxu0 %v1253_v14 }
 0x1e9   :  { %1324 = vrcp.f32 %v993_v55  ;;  %v998_v10 = vrot.slane %v991_v32, 6  ;;  %v999_v13 = vrot.slane %v991_v32, 7  ;;  %v680_v42 = vsel %vm474_vm6, %v679_v56, %v678_v50  ;;  %v1938_v32 = vpop.permute.xlu0 %850 }
 0x1ea   :  { %v614_v33 = vsel %vm477_vm7, %v613_v1, %v612_v57  ;;  %v699_v0 = vpop.permute.xlu1 %698  ;;  %1326 = vrcp.f32 %v994_v16  ;;  %v1191_v50 = vcombine.high %v1950_v19, %v1950_v19  ;;  %v923_v55 = vsub.s32 7, %v1438_v4 }
 0x1eb   :  { %v616_v3 = vadd.f32 %v614_v33, %v548_v47  ;;  %v724_v15 = vmul.f32 %v1783_v2, %v699_v0  ;;  %1328 = vrcp.f32 %v995_v60  ;;  %v727_v16 = vmul.f32 %v1783_v2, %v1861_v27 }
 0x1ec   :  { %1330 = vrcp.f32 %v996_v8  ;;  %v811_v0 = vrot.slane %v793_v34, 4  ;;  %v861_v60 = vmul.f32 %v1831_v51, %v1808_v37  ;;  %1192 = vmatprep.subr.msk.bf16.mxu0 %vm1091_vm10, %v1191_v50  ;;  %v863_v50 = vmul.f32 %v1831_v51, %v1884_v5 }
 0x1ed   :  { %v741_v44 = vrot.slane %v724_v15, 5  ;;  %1332 = vrcp.f32 %v997_v18 }
 0x1ee   :  { %1334 = vrcp.f32 %v998_v10 }
 0x1ef   :  { %v742_v57 = vsel %vm465_vm3, %v741_v44, %v1797_v23  ;;  %v647_v39 = vpop.permute.xlu1 %646  ;;  %1336 = vrcp.f32 %v999_v13 }
 0x1f0   :  { %v744_v47 = vsel %vm468_vm4, %v743_v45, %v742_v57  ;;  %v660_v21 = vmul.f32 %v1759_v48, %v647_v39  ;;  %v895_v57 = vpop.permute.xlu0 %894 }
 0x1f1   :  { %v746_v59 = vsel %vm471_vm5, %v745_v49, %v744_v47  ;;  %v747_v49 = vrot.slane %v727_v16, 2 }
 0x1f2   :  { %v681_v12 = vrot.slane %v660_v21, 1  ;;  %v1323_v54 = vpop.eup %1322 }
 0x1f3   :  { %v1325_v24 = vpop.eup %1324  ;;  %v1009_v52 = vmul.f32 %v1323_v54, %v1584_v38 }
 0x1f4   :  { %v682_v23 = vsel %vm477_vm7, %v681_v12, %v680_v42  ;;  %v767_v63 = vpop.permute.xlu1 %766  ;;  %v1327_v1 = vpop.eup %1326  ;;  %v1011_v25 = vmul.f32 %v1325_v24, %v1598_v36 }
 0x1f5   :  { %v684_v6 = vadd.f32 %v682_v23, %v616_v3  ;;  %v792_v48 = vmul.f32 %v1804_v26, %v767_v63  ;;  %v1329_v33 = vpop.eup %1328  ;;  %v794_v3 = vmul.f32 %v1804_v26, %v1865_v62  ;;  %v1013_v15 = vmul.f32 %v1327_v1, %v1593_v30  ;;  %v899_v1 = vpop.permute.xlu0 %898 }
 0x1f6   :  { %v1331_v8 = vpop.eup %1330  ;;  %v1015_v36 = vmul.f32 %v1329_v33, %v1673_v58  ;;  %v1032_v44 = vrot.slane %v1011_v25, 7 }
 0x1f7   :  { %v809_v46 = vrot.slane %v792_v48, 5  ;;  %v1333_v10 = vpop.eup %1332  ;;  %v1017_v30 = vmul.f32 %v1331_v8, %v1590_v22  ;;  %v1034_v45 = vrot.slane %v1013_v15, 6  ;;  %v813_v25 = vrot.slane %v794_v3, 3 }
 0x1f8   :  { %v1335_v13 = vpop.eup %1334  ;;  %v1033_v38 = vsel %vm459_vm1, %v1032_v44, %v1009_v52  ;;  %v1036_v39 = vrot.slane %v1015_v36, 5 }
 0x1f9   :  { %v810_v18 = vsel %vm465_vm3, %v809_v46, %v1819_v43  ;;  %v715_v27 = vpop.permute.xlu1 %714  ;;  %v1019_v43 = vmul.f32 %v1333_v10, %v1606_v20  ;;  %v1337_v58 = vpop.eup %1336  ;;  %v1021_v21 = vmul.f32 %v1335_v13, %v1667_v7  ;;  %v1035_v56 = vsel %vm462_vm2, %v1034_v45, %v1033_v38 }
 0x1fa   :  { %v812_v37 = vsel %vm468_vm4, %v811_v0, %v810_v18  ;;  %v728_v62 = vmul.f32 %v1783_v2, %v715_v27  ;;  %v1038_v12 = vrot.slane %v1017_v30, 4  ;;  %v748_v2 = vsel %vm474_vm6, %v747_v49, %v746_v59 }
 0x1fb   :  { %v1023_v22 = vmul.f32 %v1337_v58, %v1692_v11  ;;  %v1037_v42 = vsel %vm465_vm3, %v1036_v39, %v1035_v56  ;;  %v1040_v34 = vrot.slane %v1019_v43, 3  ;;  %v862_v20 = vmul.f32 %v1831_v51, %v1872_v17 }
 0x1fc   :  { %v749_v47 = vrot.slane %v728_v62, 1  ;;  %v1039_v63 = vsel %vm468_vm4, %v1038_v12, %v1037_v42  ;;  %v1042_v54 = vrot.slane %v1021_v21, 2  ;;  %v924_v11 = vrot.slane %v1729_v31, %v923_v55 }
 0x1fd   :  { %v1041_v28 = vsel %vm471_vm5, %v1040_v34, %v1039_v63  ;;  %v1044_v14 = vrot.slane %v1023_v22, 1  ;;  %v795_v17 = vmul.f32 %v1804_v26, %v1863_v29  ;;  %v881_v33 = vrot.slane %v862_v20, 3 }
 0x1fe   :  { %v750_v23 = vsel %vm477_vm7, %v749_v47, %v748_v2  ;;  %v835_v48 = vpop.permute.xlu1 %834  ;;  %v1043_v24 = vsel %vm474_vm6, %v1042_v54, %v1041_v28  ;;  %v864_v31 = vmul.f32 %v1831_v51, %v1938_v32  ;;  %v926_v55 = vmul.f32 %v924_v11, %v895_v57  ;;  %v915_v57 = vpop.permute.xlu0 %914 }
 0x1ff   :  { %v752_v7 = vadd.f32 %v750_v23, %v684_v6  ;;  %v860_v59 = vmul.f32 %v1831_v51, %v835_v48  ;;  %v1045_v16 = vsel %vm477_vm7, %v1044_v14, %v1043_v24  ;;  %v879_v6 = vrot.slane %v861_v60, 4 }
 0x200   :  { %1046 = vrot.lane.b32.xlu1 %v1045_v16, %s1396_s3  ;;  %v927_v15 = vmul.f32 %v924_v11, %v899_v1  ;;  %v814_v18 = vsel %vm471_vm5, %v813_v25, %v812_v37  ;;  %v883_v60 = vrot.slane %v863_v50, 2  ;;  %v815_v3 = vrot.slane %v795_v17, 2 }
 0x201   :  { %v877_v46 = vrot.slane %v860_v59, 5  ;;  %v941_v36 = vrot.slane %v926_v55, 7  ;;  %v885_v44 = vrot.slane %v864_v31, 1  ;;  %v1190_v47 = vcombine.low %v1950_v19, %v1950_v19 }
 0x202   :  { %v816_v51 = vsel %vm474_vm6, %v815_v3, %v814_v18  ;;  %v943_v10 = vrot.slane %v927_v15, 6 }
 0x203   :  { %v878_v0 = vsel %vm465_vm3, %v877_v46, %v1854_v35  ;;  %v783_v5 = vpop.permute.xlu1 %782  ;;  %v929_v35 = vmul.f32 %v924_v11, %v1824_v40  ;;  %v1093_v2 = vsel %vm1091_vm10, %v1190_v47, 0 }
 0x204   :  { %v880_v29 = vsel %vm468_vm4, %v879_v6, %v878_v0  ;;  %v796_v8 = vmul.f32 %v1804_v26, %v783_v5  ;;  %v925_v26 = vmul.f32 %v924_v11, %v1815_v41  ;;  %v931_v41 = vmul.f32 %v924_v11, %v915_v57  ;;  %1101 = vmatpush1.bf16.msra.mxu0 %v1093_v2 }
 0x205   :  { %v882_v27 = vsel %vm471_vm5, %v881_v33, %v880_v29  ;;  %v947_v39 = vrot.slane %v929_v35, 4 }
 0x206   :  { %v817_v52 = vrot.slane %v796_v8, 1  ;;  %v884_v32 = vsel %vm474_vm6, %v883_v60, %v882_v27  ;;  %v942_v49 = vsel %vm459_vm1, %v941_v36, %v925_v26  ;;  %v951_v23 = vrot.slane %v931_v41, 2 }
 0x207   :  { %v886_v13 = vsel %vm477_vm7, %v885_v44, %v884_v32  ;;  %v944_v58 = vsel %vm462_vm2, %v943_v10, %v942_v49 }
 0x208   :  { %v818_v62 = vsel %vm477_vm7, %v817_v52, %v816_v51  ;;  %v903_v30 = vpop.permute.xlu1 %902 }
 0x209   :  { %v820_v37 = vadd.f32 %v818_v62, %v752_v7  ;;  %v928_v45 = vmul.f32 %v924_v11, %v903_v30 }
 0x20b   :  { %v945_v43 = vrot.slane %v928_v45, 5  ;;  %v888_v38 = vadd.f32 %v886_v13, %v820_v37 }
 0x20c   :  { %v911_v40 = vpop.permute.xlu1 %910 }
 0x20d   :  { %v946_v21 = vsel %vm465_vm3, %v945_v43, %v944_v58  ;;  %v930_v56 = vmul.f32 %v924_v11, %v911_v40 }
 0x20e   :  { %v948_v12 = vsel %vm468_vm4, %v947_v39, %v946_v21 }
 0x20f   :  { %v949_v22 = vrot.slane %v930_v56, 3 }
 0x210   :  { %v919_v42 = vpop.permute.xlu1 %918 }
 0x211   :  { %v950_v34 = vsel %vm471_vm5, %v949_v22, %v948_v12  ;;  %v932_v20 = vmul.f32 %v924_v11, %v919_v42 }
 0x212   :  { %v952_v54 = vsel %vm474_vm6, %v951_v23, %v950_v34 }
 0x213   :  { %v953_v63 = vrot.slane %v932_v20, 1 }
 0x215   :  { %v954_v19 = vsel %vm477_vm7, %v953_v63, %v952_v54 }
 0x216   :  { %v956_v48 = vadd.f32 %v954_v19, %v888_v38 }
 0x218   :  { %1050 = vrot.lane.b32.xlu0 %v956_v48, %s1397_s14  ;;  %1143 = vst.msk [vmem:[#allocation4] sm:$0xff] %vm148_vm0, %v956_v48 }
 0x272   :  { %v1047_v7 = vpop.permute.xlu1 %1046 }
 0x273   :  { %v1053_v28 = vsel %vm148_vm0, %v1907_v61, %v1047_v7 }
 0x28a   :  { %v1051_v14 = vpop.permute.xlu0 %1050 }
 0x28b   :  { %v1055_v59 = vsel %vm1054_vm11, %v1053_v28, %v1051_v14 }
 0x28c   :  { %v1056_v11 = vpack.c.bf16 %v1055_v59, %v1055_v59 }
 0x28e   :  { %1193 = vmatmul.mubr.msk.bf16.vlgmr.msra.gmra.mrb[0].mxu0 %vm1087_vm12, %v1056_v11 }
 0x28f   :  { %1350 = shalt.err (!%p1347_p4)
}
 0x290   :  { %s1351_s20 = scalar_lea.hbm %s2054_s6, 128 }
 0x291   :  { %p1352_p5 = scmp.ne.s32.totalorder %s2054_s6, %s1351_s20  ;;  %p1355_p6 = scmp.lt.u32.totalorder %s1351_s20, %s2054_s6 }
 0x293   :  { %p1357_p7 = pnand %p1355_p6, %p1352_p5 }
 0x295   :  { %1360 = shalt.err (!%p1357_p7)
}
 0x296   :  { %1163 = dma.vmem_to_hbm [thread:$0]  %s1161_s16, 128, %s2054_s6, [#allocation5]   ;;  %v1060_v61 = vld [vmem:[%s2052_s4] sm:$0x3] }
 0x297   :  { %v1065_v24 = vrot.slane %v1060_v61, %v1442_v9  ;;  %v1069_v50 = vrot.slane %v1060_v61, %v515_v53  ;;  %s1399_s29 = smov [#allocation2]  }
 0x298   :  { %s1150_s30 = sshll.u32 %s1399_s29, 4  ;;  %s1151_s30 = int_to_ptr.vmem [resolvable:$true] %s1150_s30 }
 0x299   :  { %s1361_s6 = scalar_lea.vmem %s1151_s30, 256  ;;  %p1366_p9 = scmp.lt.s32.totalorder %s1151_s30, %s1151_s30 }
 0x29a   :  { %p1362_p8 = scmp.ne.s32.totalorder %s1151_s30, %s1361_s6  ;;  %p1367_p10 = scmp.lt.s32.totalorder %s1361_s6, %s1361_s6 }
 0x29c   :  { %p1368_p11 = por %p1367_p10, %p1366_p9 }
 0x29e   :  { %p1369_p12 = pnand %p1368_p11, %p1362_p8 }
 0x361   :  { %v1132_v17 = vpop.f32.mrb[0].mxu0 }
 0x362   :  { %v1133_v1 = vadd.f32 %v1132_v17, %v1065_v24  ;;  %v1134_v16 = vpop.f32.mrb[1].mxu0 }
 0x363   :  { %v1135_v46 = vadd.f32 %v1134_v16, %v1069_v50  ;;  %v1136_v6 = vpop.f32.mrb[2].mxu0 }
 0x364   :  { %v1139_v25 = vmax.f32 %v1133_v1, 0.0  ;;  %v1137_v33 = vpop.f32.mrb[3].mxu0 }
 0x365   :  { %v1140_v31 = vmax.f32 %v1135_v46, 0.0 }
 0x366   :  { %1141 = vst [vmem:[#allocation2] sm:$0xff] %v1139_v25 }
 0x367   :  { %1142 = vst [vmem:[#allocation2 + $0x8] sm:$0xff] %v1140_v31 }
 0x368   :  { %1372 = shalt.err (!%p1369_p12)
}
 0x369   :  { %s1373_s7 = scalar_lea.hbm %s2053_s5, 256 }
 0x36a   :  { %p1374_p13 = scmp.ne.s32.totalorder %s2053_s5, %s1373_s7  ;;  %p1377_p0 = scmp.lt.u32.totalorder %s1373_s7, %s2053_s5 }
 0x36c   :  { %p1379_p1 = pnand %p1377_p0, %p1374_p13 }
 0x36e   :  { %1382 = shalt.err (!%p1379_p1)
}
 0x36f   :  { %1153 = dma.vmem_to_hbm [thread:$0]  %s1151_s30, 256, %s2053_s5, [#allocation3]  }
 0x370   :  { %1383 = dma.done.wait [#allocation3], 256  }
 0x371   :  { %1384 = vsyncadd [#allocation3], 4294967040 }
 0x372   :  { %1385 = dma.done.wait [#allocation5], 128  }
 0x373   :  { %1386 = vsyncadd [#allocation5], 4294967168 }
 0x374   :  { %1170 = vsyncpa [#allocation3], 1 }
 0x375   :  { %1171 = vsyncpa [#allocation5], 1 }

</bundles_post_ra>
